<compile_context>
chip_gen: v5e
topology: v5e:2x2
jax: 0.10.0
libtpu: 0.0.40
codegen_flags: <defaults>
</compile_context>

<pallas_src>
import functools

import jax
import jax.numpy as jnp
from jax.experimental import pallas as pl
from jax.experimental.pallas import tpu as pltpu


# ----------------------------------------------------------------------------
# Pallas kernel: pooler (matmul + bias + tanh) -> dropout -> dense (matmul+bias)
# ----------------------------------------------------------------------------
def _fused_head_kernel(*refs, p):
    if p > 0.0:
        x_ref, bits_ref, pw_ref, pb_ref, dw_ref, db_ref, o_ref = refs
    else:
        x_ref, pw_ref, pb_ref, dw_ref, db_ref, o_ref = refs
        bits_ref = None

    # Pooler head: tanh(x @ pooler_w + pooler_b)   (MXU + EUP)
    pooled = jnp.tanh(
        jnp.dot(x_ref[...], pw_ref[...], preferred_element_type=jnp.float32)
        + pb_ref[...]
    )

    # Dropout (inverted scaling), single integer compare + select.
    if p > 0.0:
        thresh = jnp.uint32(min(int(round(p * (1 << 32))), (1 << 32) - 1))
        inv_keep = jnp.float32(1.0 / (1.0 - p))
        pooled = jnp.where(bits_ref[...] >= thresh, pooled * inv_keep, 0.0)

    # Dense head: pooled @ dense_w + dense_b  (lane-dense padded output)
    o_ref[...] = (
        jnp.dot(pooled, dw_ref[...], preferred_element_type=jnp.float32) + db_ref[...]
    )


def fused_pooler_dropout_dense(pooled_pre, pooler_w, pooler_b, dense_w, dense_b,
                               *, dr_rate, rng_key=None):
    """pooled_pre: (B, H) f32;  pooler_w: (H, H);  dense_w: (H, C)."""
    B, H = pooled_pre.shape
    C = dense_w.shape[1]
    C_pad = ((C + 127) // 128) * 128                      # lane-dense output columns

    p = float(dr_rate) if dr_rate else 0.0
    assert 0.0 <= p < 1.0, "dr_rate must be in [0, 1)"

    # Pad the dense weights/bias to C_pad lanes (zero columns -> zero logits,
    # sliced away after the kernel).
    dw_pad = jnp.zeros((H, C_pad), jnp.float32).at[:, :C].set(dense_w.astype(jnp.float32))
    db_pad = jnp.zeros((1, C_pad), jnp.float32).at[:, :C].set(
        dense_b.astype(jnp.float32).reshape(1, C))
    pb2 = pooler_b.astype(jnp.float32).reshape(1, H)
    x = pooled_pre.astype(jnp.float32)

    # Batch tile: full B for small batches; 256-row tiles for large batches so
    # v7x (2 TCs, 64 MiB VMEM) shards the grid and v6e fills its 256-row MXU.
    TB = 256 if (B > 256 and B % 8 == 0) else B
    grid = (pl.cdiv(B, TB),)

    in_specs = [pl.BlockSpec((TB, H), lambda i: (i, 0))]          # x
    inputs = [x]
    if p > 0.0:
        assert rng_key is not None, "rng_key required when dropout is active"
        bits = jax.random.bits(rng_key, (B, H), dtype=jnp.uint32)
        in_specs.append(pl.BlockSpec((TB, H), lambda i: (i, 0)))  # dropout bits
        inputs.append(bits)
    in_specs += [
        pl.BlockSpec((H, H), lambda i: (0, 0)),       # pooler_w (resident)
        pl.BlockSpec((1, H), lambda i: (0, 0)),       # pooler_b
        pl.BlockSpec((H, C_pad), lambda i: (0, 0)),   # dense_w (padded)
        pl.BlockSpec((1, C_pad), lambda i: (0, 0)),   # dense_b (padded)
    ]
    inputs += [pooler_w.astype(jnp.float32), pb2, dw_pad, db_pad]

    cost = pl.CostEstimate(
        flops=2 * B * H * H + 2 * B * H * C_pad,
        transcendentals=B * H,
        bytes_accessed=4 * (2 * B * H + H * H + H + H * C_pad + C_pad + B * C_pad),
    )

    out = pl.pallas_call(
        functools.partial(_fused_head_kernel, p=p),
        out_shape=jax.ShapeDtypeStruct((B, C_pad), jnp.float32),
        grid=grid,
        in_specs=in_specs,
        out_specs=pl.BlockSpec((TB, C_pad), lambda i: (i, 0)),
        compiler_params=pltpu.CompilerParams(dimension_semantics=("parallel",)),
        cost_estimate=cost,
    )(*inputs)

    return out[:, :C]


# ----------------------------------------------------------------------------
# Deterministic stand-in for the external `bert` backbone (plain-JAX glue).
# TODO(synk): the pretrained BERT encoder passed into __init__ has no clean
# Pallas equivalent here; we emulate it with an embedding lookup + masked
# mean-pool.  Its tanh pooler head is fused into the Pallas kernel above.
# ----------------------------------------------------------------------------
def bert_stub_encode(params, input_ids, attention_mask, token_type_ids):
    emb = params["tok_emb"][input_ids] + params["type_emb"][token_type_ids]   # (B, S, H)
    mask = attention_mask.astype(jnp.float32)[..., None]                      # (B, S, 1)
    pooled = (emb * mask).sum(axis=1) / jnp.maximum(mask.sum(axis=1), 1.0)    # (B, H)
    return pooled


def emotional_custom_model_forward(params, input_ids, attention_mask, token_type_ids,
                                   *, dr_rate, rng_key=None):
    pooled_pre = bert_stub_encode(params, input_ids, attention_mask, token_type_ids)
    return fused_pooler_dropout_dense(
        pooled_pre, params["pooler_w"], params["pooler_b"],
        params["dense_w"], params["dense_b"],
        dr_rate=dr_rate, rng_key=rng_key)


# ----------------------------------------------------------------------------
# Deterministic parameter init + example run
# ----------------------------------------------------------------------------
def init_params(key, vocab=32, hidden=128, num_classes=2):
    ks = jax.random.split(key, 5)
    s = 0.02
    return {
        "tok_emb":  s * jax.random.normal(ks[0], (vocab, hidden), jnp.float32),
        "type_emb": s * jax.random.normal(ks[1], (2, hidden), jnp.float32),
        "pooler_w": s * jax.random.normal(ks[2], (hidden, hidden), jnp.float32),
        "pooler_b": jnp.zeros((hidden,), jnp.float32),
        "dense_w":  s * jax.random.normal(ks[3], (hidden, num_classes), jnp.float32),
        "dense_b":  jnp.zeros((num_classes,), jnp.float32),
    }


if __name__ == "__main__":
    key = jax.random.PRNGKey(0)
    B, S, V, H, C = 8, 8, 32, 128, 2

    params = init_params(key, vocab=V, hidden=H, num_classes=C)

    k_ids, k_mask = jax.random.split(jax.random.fold_in(key, 1))
    input_ids = jax.random.randint(k_ids, (B, S), 0, V, dtype=jnp.int32)
    attention_mask = (jax.random.uniform(k_mask, (B, S)) > 0.2).astype(jnp.int32)
    token_type_ids = jnp.zeros((B, S), dtype=jnp.int32)

    # Correctness check with p=0 (dropout is identity) against a pure-JAX reference.
    pooled_pre = bert_stub_encode(params, input_ids, attention_mask, token_type_ids)
    pooled = jnp.tanh(pooled_pre @ params["pooler_w"] + params["pooler_b"])
    ref = pooled @ params["dense_w"] + params["dense_b"]
    got = fused_pooler_dropout_dense(
        pooled_pre, params["pooler_w"], params["pooler_b"],
        params["dense_w"], params["dense_b"], dr_rate=0.0)
    got = jax.block_until_ready(got)
    assert got.shape == (B, C)
    assert jnp.allclose(got, ref, atol=1e-5, rtol=1e-5), "p=0 path mismatch"

    # Full forward with dropout active (dr_rate=0.1), as in training.
    logits = emotional_custom_model_forward(
        params, input_ids, attention_mask, token_type_ids,
        dr_rate=0.1, rng_key=jax.random.PRNGKey(1234))
    logits = jax.block_until_ready(logits)
    assert logits.shape == (B, C) and logits.dtype == jnp.float32
    assert bool(jnp.all(jnp.isfinite(logits)))

    print("KERNEL_OK")
</pallas_src>

<mosaic_0001>
module attributes {stable_mosaic.version = 11 : i64} {
  func.func @_fused_head_kernel(%arg0: i32, %arg1: memref<8x128xf32, #tpu.memory_space<vmem>>, %arg2: memref<128x128xf32, #tpu.memory_space<vmem>>, %arg3: memref<1x128xf32, #tpu.memory_space<vmem>>, %arg4: memref<128x128xf32, #tpu.memory_space<vmem>>, %arg5: memref<1x128xf32, #tpu.memory_space<vmem>>, %arg6: memref<8x128xf32, #tpu.memory_space<vmem>>) attributes {dimension_semantics = [#tpu.dimension_semantics<parallel>], iteration_bounds = array<i64: 1>, scalar_prefetch = 0 : i64, scratch_operands = 0 : i64, tpu.core_type = #tpu.core_type<tc>, window_params = [{transform_indices = @transform_0, window_bounds = array<i64: 8, 128>}, {pipeline_mode = #tpu.pipeline_mode<synchronous>, transform_indices = @transform_1, window_bounds = array<i64: 128, 128>}, {pipeline_mode = #tpu.pipeline_mode<synchronous>, transform_indices = @transform_2, window_bounds = array<i64: 1, 128>}, {pipeline_mode = #tpu.pipeline_mode<synchronous>, transform_indices = @transform_3, window_bounds = array<i64: 128, 128>}, {pipeline_mode = #tpu.pipeline_mode<synchronous>, transform_indices = @transform_4, window_bounds = array<i64: 1, 128>}, {transform_indices = @transform_5, window_bounds = array<i64: 8, 128>}]} {
    %c0 = arith.constant 0 : index
    %c0_0 = arith.constant 0 : index
    %0 = vector.load %arg1[%c0, %c0_0] : memref<8x128xf32, #tpu.memory_space<vmem>>, vector<8x128xf32>
    %c0_1 = arith.constant 0 : index
    %c0_2 = arith.constant 0 : index
    %1 = vector.load %arg2[%c0_1, %c0_2] : memref<128x128xf32, #tpu.memory_space<vmem>>, vector<128x128xf32>
    %cst = arith.constant dense<0.000000e+00> : vector<8x128xf32>
    %2 = tpu.matmul %0, %1, %cst {dimension_numbers = #tpu.dot_dimension_numbers<[1], [0], [0], [1], [0, 0, 1, 1], [], []>} : vector<8x128xf32>, vector<128x128xf32>, vector<8x128xf32> -> vector<8x128xf32>
    %c0_3 = arith.constant 0 : index
    %c0_4 = arith.constant 0 : index
    %3 = vector.load %arg3[%c0_3, %c0_4] : memref<1x128xf32, #tpu.memory_space<vmem>>, vector<1x128xf32>
    %4 = vector.broadcast %3 : vector<1x128xf32> to vector<8x128xf32>
    %5 = arith.addf %2, %4 : vector<8x128xf32>
    %6 = math.tanh %5 : vector<8x128xf32>
    %c0_5 = arith.constant 0 : index
    %c0_6 = arith.constant 0 : index
    %7 = vector.load %arg4[%c0_5, %c0_6] : memref<128x128xf32, #tpu.memory_space<vmem>>, vector<128x128xf32>
    %cst_7 = arith.constant dense<0.000000e+00> : vector<8x128xf32>
    %8 = tpu.matmul %6, %7, %cst_7 {dimension_numbers = #tpu.dot_dimension_numbers<[1], [0], [0], [1], [0, 0, 1, 1], [], []>} : vector<8x128xf32>, vector<128x128xf32>, vector<8x128xf32> -> vector<8x128xf32>
    %c0_8 = arith.constant 0 : index
    %c0_9 = arith.constant 0 : index
    %9 = vector.load %arg5[%c0_8, %c0_9] : memref<1x128xf32, #tpu.memory_space<vmem>>, vector<1x128xf32>
    %10 = vector.broadcast %9 : vector<1x128xf32> to vector<8x128xf32>
    %11 = arith.addf %8, %10 : vector<8x128xf32>
    %c0_10 = arith.constant 0 : index
    %c0_11 = arith.constant 0 : index
    %12 = vector.load %arg6[%c0_10, %c0_11] : memref<8x128xf32, #tpu.memory_space<vmem>>, vector<8x128xf32>
    tpu.vector_store %arg6[%c0_10, %c0_11], %11 {strides = array<i32>} : memref<8x128xf32, #tpu.memory_space<vmem>>, vector<8x128xf32>,
    return
  }
  func.func @transform_0(%arg0: i32) -> (i32, i32) {
    %c0_i32 = arith.constant 0 : i32
    %c0_i32_0 = arith.constant 0 : i32
    return %arg0, %c0_i32 : i32, i32
  }
  func.func @transform_1(%arg0: i32) -> (i32, i32) {
    %c0_i32 = arith.constant 0 : i32
    %c0_i32_0 = arith.constant 0 : i32
    %c0_i32_1 = arith.constant 0 : i32
    return %c0_i32, %c0_i32_0 : i32, i32
  }
  func.func @transform_2(%arg0: i32) -> (i32, i32) {
    %c0_i32 = arith.constant 0 : i32
    %c0_i32_0 = arith.constant 0 : i32
    %c0_i32_1 = arith.constant 0 : i32
    return %c0_i32, %c0_i32_0 : i32, i32
  }
  func.func @transform_3(%arg0: i32) -> (i32, i32) {
    %c0_i32 = arith.constant 0 : i32
    %c0_i32_0 = arith.constant 0 : i32
    %c0_i32_1 = arith.constant 0 : i32
    return %c0_i32, %c0_i32_0 : i32, i32
  }
  func.func @transform_4(%arg0: i32) -> (i32, i32) {
    %c0_i32 = arith.constant 0 : i32
    %c0_i32_0 = arith.constant 0 : i32
    %c0_i32_1 = arith.constant 0 : i32
    return %c0_i32, %c0_i32_0 : i32, i32
  }
  func.func @transform_5(%arg0: i32) -> (i32, i32) {
    %c0_i32 = arith.constant 0 : i32
    %c0_i32_0 = arith.constant 0 : i32
    return %arg0, %c0_i32 : i32, i32
  }
}

</mosaic_0001>

<bundles_post_ra>
// kernel: tpu_custom_call.1
= control target key start
LH: loop header
LB: loop body
LE: loop exit
PB: predicated region body
PF: predicated region fallthrough
CT: control target
= control target key end

     0   :  { %10 = vsyncpa [#allocation3], 0  ;;  %s333_s0 = inlined_call_operand.hbm [shape: f32[8,128], index: 0, kind: input, shape index: {}]   ;;  %s334_s1 = inlined_call_operand.hbm [shape: f32[128,128], index: 1, kind: input, shape index: {}]   ;;  %s335_s2 = inlined_call_operand.vmem [shape: f32[1,128], index: 2, kind: input, shape index: {}]   ;;  %s336_s3 = inlined_call_operand.hbm [shape: f32[128,128], index: 3, kind: input, shape index: {}]   ;;  %s337_s4 = inlined_call_operand.vmem [shape: f32[1,128], index: 4, kind: input, shape index: {}]   ;;  %s338_s5 = inlined_call_operand.hbm [shape: f32[8,128], index: 5, kind: output, shape index: {}]  }
   0x1   :  { %11 = vsyncpa [#allocation6], 0  ;;  %s28_s20 = sshll.u32 %s334_s1, 4  ;;  %s29_s20 = int_to_ptr.hbm [resolvable:$true] %s28_s20 }
   0x2   :  { %12 = vsyncpa [#allocation4], 0  ;;  %s279_s21 = smov [#allocation5]   ;;  %s18_s25 = sshll.u32 %s333_s0, 4  ;;  %s19_s25 = int_to_ptr.hbm [resolvable:$true] %s18_s25 }
   0x3   :  { %s30_s22 = sshll.u32 %s279_s21, 4  ;;  %s280_s26 = smov 128   ;;  %s31_s22 = int_to_ptr.vmem [resolvable:$true] %s30_s22 }
   0x4   :  { %s281_s27 = smov 8   ;;  %s282_s28 = smov [#allocation2]  }
   0x5   :  { %36 = dma.hbm_to_vmem [thread:$0]  %s29_s20, 2048, %s31_s22, [#allocation6], %s280_s26, %s280_s26, %s281_s27  }
   0x6   :  { %s20_s29 = sshll.u32 %s282_s28, 4  ;;  %s43_s7 = sshll.u32 %s336_s3, 4  ;;  %s21_s29 = int_to_ptr.vmem [resolvable:$true] %s20_s29  ;;  %s44_s7 = int_to_ptr.hbm [resolvable:$true] %s43_s7 }
   0x7   :  { %23 = dma.hbm_to_vmem [thread:$0]  %s19_s25, 128, %s21_s29, [#allocation3]  }
   0x8   :  { %s283_s1 = smov [#allocation7]  }
   0x9   :  { %s45_s8 = sshll.u32 %s283_s1, 4  ;;  %s46_s8 = int_to_ptr.vmem [resolvable:$true] %s45_s8 }
   0xa   :  { %51 = dma.hbm_to_vmem [thread:$0]  %s44_s7, 2048, %s46_s8, [#allocation6], %s280_s26, %s280_s26, %s281_s27  }
   0xb   :  { %273 = dma.done.wait [#allocation3], 128  }
   0xc   :  { %274 = vsyncadd [#allocation3], 4294967168 }
   0xd   :  { %275 = dma.done.wait [#allocation6], 4096  }
   0xe   :  { %276 = vsyncadd [#allocation6], 4294963200  ;;  %v82_v0 = vld [vmem:[#allocation5 + $0x78] sm:$0xff]  ;;  %v81_v1 = vld [vmem:[#allocation5 + $0x70] sm:$0xff]  ;;  %s284_s11 = smov [#allocation8]   ;;  %s156_s15 = sshll.u32 %s338_s5, 4  ;;  %s157_s15 = int_to_ptr.hbm [resolvable:$true] %s156_s15 }
   0xf   :  { %87 = vmatpush.msra.mxu0 %v82_v0  ;;  %v80_v2 = vld [vmem:[#allocation5 + $0x68] sm:$0xff]  ;;  %v79_v3 = vld [vmem:[#allocation5 + $0x60] sm:$0xff]  ;;  %v123_v4 = vld [vmem:[#allocation7 + $0x78] sm:$0xff]  ;;  %s154_s12 = sshll.u32 %s284_s11, 4  ;;  %s155_s12 = int_to_ptr.vmem [resolvable:$true] %s154_s12 }
  0x10   :  { %v78_v5 = vld [vmem:[#allocation5 + $0x58] sm:$0xff]  ;;  %128 = vmatpush.msra.mxu1 %v123_v4  ;;  %v122_v6 = vld [vmem:[#allocation7 + $0x70] sm:$0xff]  ;;  %v121_v7 = vld [vmem:[#allocation7 + $0x68] sm:$0xff] }
  0x11   :  { %88 = vmatpush.msra.mxu0 %v81_v1  ;;  %v77_v8 = vld [vmem:[#allocation5 + $0x50] sm:$0xff]  ;;  %v120_v9 = vld [vmem:[#allocation7 + $0x60] sm:$0xff]  ;;  %v76_v10 = vld [vmem:[#allocation5 + $0x48] sm:$0xff] }
  0x12   :  { %129 = vmatpush.msra.mxu1 %v122_v6  ;;  %v119_v11 = vld [vmem:[#allocation7 + $0x58] sm:$0xff]  ;;  %v75_v12 = vld [vmem:[#allocation5 + $0x40] sm:$0xff]  ;;  %v118_v13 = vld [vmem:[#allocation7 + $0x50] sm:$0xff] }
  0x13   :  { %89 = vmatpush.msra.mxu0 %v80_v2  ;;  %v74_v14 = vld [vmem:[#allocation5 + $0x38] sm:$0xff]  ;;  %v117_v15 = vld [vmem:[#allocation7 + $0x48] sm:$0xff]  ;;  %v73_v16 = vld [vmem:[#allocation5 + $0x30] sm:$0xff] }
  0x14   :  { %130 = vmatpush.msra.mxu1 %v121_v7  ;;  %v116_v17 = vld [vmem:[#allocation7 + $0x40] sm:$0xff]  ;;  %v72_v18 = vld [vmem:[#allocation5 + $0x28] sm:$0xff]  ;;  %v115_v19 = vld [vmem:[#allocation7 + $0x38] sm:$0xff] }
  0x15   :  { %90 = vmatpush.msra.mxu0 %v79_v3  ;;  %v71_v20 = vld [vmem:[#allocation5 + $0x20] sm:$0xff]  ;;  %v114_v21 = vld [vmem:[#allocation7 + $0x30] sm:$0xff]  ;;  %v70_v22 = vld [vmem:[#allocation5 + $0x18] sm:$0xff] }
  0x16   :  { %131 = vmatpush.msra.mxu1 %v120_v9  ;;  %v113_v23 = vld [vmem:[#allocation7 + $0x28] sm:$0xff]  ;;  %v69_v24 = vld [vmem:[#allocation5 + $0x10] sm:$0xff]  ;;  %v67_v26 = vld [vmem:[#allocation5] sm:$0xff] }
  0x17   :  { %91 = vmatpush.msra.mxu0 %v78_v5  ;;  %v68_v25 = vld [vmem:[#allocation5 + $0x8] sm:$0xff]  ;;  %v66_v27 = vld [vmem:[#allocation2] sm:$0xff]  ;;  %v112_v28 = vld [vmem:[#allocation7 + $0x20] sm:$0xff] }
  0x18   :  { %132 = vmatpush.msra.mxu1 %v119_v11  ;;  %v111_v29 = vld [vmem:[#allocation7 + $0x18] sm:$0xff]  ;;  %v110_v30 = vld [vmem:[#allocation7 + $0x10] sm:$0xff]  ;;  %v109_v31 = vld [vmem:[#allocation7 + $0x8] sm:$0xff] }
  0x19   :  { %92 = vmatpush.msra.mxu0 %v77_v8  ;;  %v108_v32 = vld [vmem:[#allocation7] sm:$0xff]  ;;  %v173_v33 = vld [vmem:[%s335_s2] ss:$0 sm:$0xff] }
  0x1a   :  { %133 = vmatpush.msra.mxu1 %v118_v13  ;;  %v174_v37 = vld [vmem:[%s337_s4] ss:$0 sm:$0xff] }
  0x1b   :  { %93 = vmatpush.msra.mxu0 %v76_v10 }
  0x1c   :  { %134 = vmatpush.msra.mxu1 %v117_v15 }
  0x1d   :  { %94 = vmatpush.msra.mxu0 %v75_v12 }
  0x1e   :  { %135 = vmatpush.msra.mxu1 %v116_v17 }
  0x1f   :  { %95 = vmatpush.msra.mxu0 %v74_v14 }
  0x20   :  { %136 = vmatpush.msra.mxu1 %v115_v19 }
  0x21   :  { %96 = vmatpush.msra.mxu0 %v73_v16 }
  0x22   :  { %137 = vmatpush.msra.mxu1 %v114_v21 }
  0x23   :  { %97 = vmatpush.msra.mxu0 %v72_v18 }
  0x24   :  { %138 = vmatpush.msra.mxu1 %v113_v23 }
  0x25   :  { %98 = vmatpush.msra.mxu0 %v71_v20 }
  0x26   :  { %139 = vmatpush.msra.mxu1 %v112_v28 }
  0x27   :  { %99 = vmatpush.msra.mxu0 %v70_v22 }
  0x28   :  { %140 = vmatpush.msra.mxu1 %v111_v29 }
  0x29   :  { %100 = vmatpush.msra.mxu0 %v69_v24 }
  0x2a   :  { %141 = vmatpush.msra.mxu1 %v110_v30 }
  0x2b   :  { %101 = vmatpush.msra.mxu0 %v68_v25 }
  0x2c   :  { %142 = vmatpush.msra.mxu1 %v109_v31 }
  0x2d   :  { %102 = vmatpush.msra.mxu0 %v67_v26 }
  0x2e   :  { %103 = vmatmul.f32.vlgmr.msra.gmra.mxu0 %v66_v27  ;;  %143 = vmatpush.msra.mxu1 %v108_v32 }
  0xab   :  { %v104_v34 = vpop.f32.mrf.mxu0 }
  0xac   :  { %v105_v35 = vadd.f32 %v173_v33, %v104_v34 }
  0xae   :  { %175 = vtanh.f32 %v105_v35 }
  0xb4   :  { %v176_v36 = vpop.eup %175 }
  0xb5   :  { %144 = vmatmul.f32.vlgmr.msra.gmra.mxu1 %v176_v36 }
 0x132   :  { %v145_v38 = vpop.f32.mrf.mxu1 }
 0x133   :  { %v146_v39 = vadd.f32 %v174_v37, %v145_v38 }
 0x135   :  { %148 = vst [vmem:[#allocation8] sm:$0xff] %v146_v39 }
 0x136   :  { %159 = dma.vmem_to_hbm [thread:$0]  %s155_s12, 128, %s157_s15, [#allocation4]  }
 0x137   :  { %277 = dma.done.wait [#allocation4], 128  }
 0x138   :  { %278 = vsyncadd [#allocation4], 4294967168 }
 0x139   :  { %164 = vsyncpa [#allocation3], 1 }
 0x13a   :  { %165 = vsyncpa [#allocation6], 1 }
 0x13b   :  { %166 = vsyncpa [#allocation4], 1 }

</bundles_post_ra>
